<compile_context>
chip_gen: v7x
topology: tpu7x:2x2x1
jax: 0.10.0
libtpu: 0.0.40
codegen_flags: <defaults>
</compile_context>

<pallas_src>
import jax
import jax.numpy as jnp
from jax.experimental import pallas as pl
from jax.experimental.pallas import tpu as pltpu


def _round_up(x, m):
    return (x + m - 1) // m * m


def _gru_kernel(gi_ref, len_ref, whh_ref, bhn_ref, wfc_ref, bfc_ref,
                out_ref, h_scr):
    """Grid = (batch_tiles, time_chunks); one grid step == Tc GRU timesteps.

    gi_ref  : (Tc, Bt, 3Hp) f32   precomputed x@W_ih^T + b_ih (+ b_hh r/z parts)
    len_ref : (Bt, 1)       int32 valid lengths
    whh_ref : (Hp, 3Hp)     bf16  W_hh^T, gate-padded (r|z|n, each Hp lanes)
    bhn_ref : (1, Hp)       f32   n-gate hidden bias (must stay inside r*(...))
    wfc_ref : (Hp, Cp)      bf16  W_fc^T (zero-padded)
    bfc_ref : (1, Cp)       f32
    out_ref : (Bt, Cp)      f32   logits (written on last time chunk)
    h_scr   : (Bt, Hp)      f32   persistent hidden state (VMEM scratch)
    """
    c = pl.program_id(1)                 # time-chunk index (sequential axis)
    Tc = gi_ref.shape[0]
    Hp = whh_ref.shape[0]

    @pl.when(c == 0)
    def _init():
        h_scr[...] = jnp.zeros_like(h_scr)

    whh = whh_ref[...]                   # (Hp, 3Hp) bf16, resident
    lens = len_ref[...]                  # (Bt, 1) int32
    # Hoist the (1,Hp)->(Bt,Hp) broadcast out of the per-step loop.
    bhn = jnp.broadcast_to(bhn_ref[...], h_scr.shape)
    t0 = c * Tc

    def step(j, h):
        gi = gi_ref[j]                                          # (Bt, 3Hp) f32
        gh = jnp.dot(h.astype(jnp.bfloat16), whh,
                     preferred_element_type=jnp.float32)        # (Bt, 3Hp) f32
        # Gate splits at multiples of Hp (k*128) -> lane-aligned, free.
        r = jax.nn.sigmoid(gi[:, 0:Hp] + gh[:, 0:Hp])
        z = jax.nn.sigmoid(gi[:, Hp:2 * Hp] + gh[:, Hp:2 * Hp])
        n = jnp.tanh(gi[:, 2 * Hp:3 * Hp] + r * (gh[:, 2 * Hp:3 * Hp] + bhn))
        h_new = (1.0 - z) * n + z * h
        # pack_padded_sequence semantics: freeze h once t >= lengths[b].
        valid = (t0 + j) < lens                                 # (Bt, 1) bool
        return jnp.where(valid, h_new, h)

    h_scr[...] = jax.lax.fori_loop(0, Tc, step, h_scr[...], unroll=True)

    @pl.when(c == pl.num_programs(1) - 1)
    def _finalize():
        logits = jnp.dot(h_scr[...].astype(jnp.bfloat16), wfc_ref[...],
                         preferred_element_type=jnp.float32) + bfc_ref[...]
        out_ref[...] = logits.astype(out_ref.dtype)


def text_gru_forward(token_ids, lengths, params, *, chunk_t=16, batch_tile=None):
    """token_ids: (B, T) int32, lengths: (B,) int32. Returns (B, C) f32 logits."""
    emb = params["embedding"]                       # (V, E)
    w_ih, w_hh = params["w_ih"], params["w_hh"]     # (3H, E), (3H, H)
    b_ih, b_hh = params["b_ih"], params["b_hh"]     # (3H,), (3H,)
    w_fc, b_fc = params["w_fc"], params["b_fc"]     # (C, H), (C,)

    B, T = token_ids.shape
    E = emb.shape[1]
    H = w_hh.shape[1]
    C = w_fc.shape[0]

    f32, bf16 = jnp.float32, jnp.bfloat16
    Hp = _round_up(H, 128)               # lane-aligned gate width
    Cp = _round_up(C, 128)               # lane-dense output store
    G = 3 * Hp

    # Batch tile (leading "parallel" grid axis; lets v7x use both TensorCores).
    # If < B it must be a multiple of 8; default keeps one tile of the full batch.
    Bt = B if batch_tile is None else batch_tile
    assert B % Bt == 0, "batch_tile must divide B"
    Tc = min(chunk_t, T)
    T_pad = _round_up(T, Tc)

    # ---- weight repacking: transpose, gate-pad to Hp, zero-pad rows/cols ----
    def gate_pack_w(w):                  # (3H, K) -> (K, 3Hp)
        cols = []
        for g in range(3):
            wg = jnp.transpose(w[g * H:(g + 1) * H]).astype(f32)   # (K, H)
            cols.append(jnp.pad(wg, ((0, 0), (0, Hp - H))))
        return jnp.concatenate(cols, axis=1)

    def gate_pack_b(b):                  # (3H,) -> (3Hp,)
        return jnp.concatenate(
            [jnp.pad(b[g * H:(g + 1) * H].astype(f32), (0, Hp - H))
             for g in range(3)])

    wih_t = gate_pack_w(w_ih)                                     # (E, 3Hp)
    whh_t = jnp.pad(gate_pack_w(w_hh), ((0, Hp - H), (0, 0)))     # (Hp, 3Hp)
    bih_p = gate_pack_b(b_ih)
    bhh_p = gate_pack_b(b_hh)
    # Fold b_ih plus the r/z parts of b_hh into the hoisted input projection;
    # the n-gate hidden bias must remain inside r*(W_hn h + b_hn).
    bias_fold = bih_p + jnp.concatenate([bhh_p[:2 * Hp], jnp.zeros((Hp,), f32)])
    bhn = bhh_p[2 * Hp:].reshape(1, Hp)

    wfc_t = jnp.pad(jnp.transpose(w_fc).astype(f32),
                    ((0, Hp - H), (0, Cp - C)))                   # (Hp, Cp)
    bfc_p = jnp.pad(b_fc.astype(f32), (0, Cp - C)).reshape(1, Cp)

    # ---- glue: embedding gather (time-major, no activation transpose) and the
    # hoisted batched input projection as ONE large MXU-friendly matmul. ----
    # TODO(synk): embedding gather stays as an XLA gather (no rectangular BlockSpec).
    x_tbe = jnp.take(emb, jnp.transpose(token_ids), axis=0)      # (T, B, E) f32
    gi_all = jnp.dot(x_tbe.reshape(T * B, E).astype(bf16),
                     wih_t.astype(bf16),
                     preferred_element_type=f32) + bias_fold      # (T*B, 3Hp) f32
    gi_all = gi_all.reshape(T, B, G)
    if T_pad != T:
        # Padded timesteps are masked out by the t < lengths freeze.
        gi_all = jnp.pad(gi_all, ((0, T_pad - T), (0, 0), (0, 0)))

    len2d = lengths.astype(jnp.int32).reshape(B, 1)

    out = pl.pallas_call(
        _gru_kernel,
        out_shape=jax.ShapeDtypeStruct((B, Cp), f32),
        grid_spec=pltpu.PrefetchScalarGridSpec(
            num_scalar_prefetch=0,
            grid=(B // Bt, T_pad // Tc),
            in_specs=[
                pl.BlockSpec((Tc, Bt, G), lambda b, c: (c, b, 0)),  # gi chunk
                pl.BlockSpec((Bt, 1), lambda b, c: (b, 0)),         # lengths
                pl.BlockSpec((Hp, G), lambda b, c: (0, 0)),         # W_hh^T (bf16)
                pl.BlockSpec((1, Hp), lambda b, c: (0, 0)),         # b_hn
                pl.BlockSpec((Hp, Cp), lambda b, c: (0, 0)),        # W_fc^T (bf16)
                pl.BlockSpec((1, Cp), lambda b, c: (0, 0)),         # b_fc
            ],
            out_specs=pl.BlockSpec((Bt, Cp), lambda b, c: (b, 0)),
            scratch_shapes=[pltpu.VMEM((Bt, Hp), f32)],
        ),
        compiler_params=pltpu.CompilerParams(
            dimension_semantics=("parallel", "arbitrary"),
            vmem_limit_bytes=64 * 1024 * 1024,
        ),
    )(gi_all, len2d, whh_t.astype(bf16), bhn, wfc_t.astype(bf16), bfc_p)

    return out[:, :C]


def text_gru_reference(token_ids, lengths, params):
    """Pure-JAX f32 reference matching PyTorch packed-GRU semantics (eval mode)."""
    emb = params["embedding"]
    w_ih, w_hh = params["w_ih"], params["w_hh"]
    b_ih, b_hh = params["b_ih"], params["b_hh"]
    w_fc, b_fc = params["w_fc"], params["b_fc"]
    B, T = token_ids.shape
    H = w_hh.shape[1]

    x = jnp.take(emb, token_ids, axis=0).astype(jnp.float32)  # (B, T, E)

    def step(h, inp):
        x_t, t = inp
        gi = x_t @ w_ih.T + b_ih
        gh = h @ w_hh.T + b_hh
        i_r, i_z, i_n = jnp.split(gi, 3, axis=-1)
        h_r, h_z, h_n = jnp.split(gh, 3, axis=-1)
        r = jax.nn.sigmoid(i_r + h_r)
        z = jax.nn.sigmoid(i_z + h_z)
        n = jnp.tanh(i_n + r * h_n)
        h_new = (1.0 - z) * n + z * h
        valid = (t < lengths)[:, None]
        h = jnp.where(valid, h_new, h)
        return h, None

    h0 = jnp.zeros((B, H), jnp.float32)
    xs = (jnp.transpose(x, (1, 0, 2)), jnp.arange(T))
    h_last, _ = jax.lax.scan(step, h0, xs)
    return h_last @ w_fc.T + b_fc


def init_params(key, vocab_size, embed_dim, hidden_dim, num_classes):
    ks = jax.random.split(key, 7)
    s = 1.0 / jnp.sqrt(hidden_dim)
    u = lambda k, shape, scale: jax.random.uniform(
        k, shape, jnp.float32, minval=-scale, maxval=scale)
    return {
        "embedding": jax.random.normal(ks[0], (vocab_size, embed_dim), jnp.float32),
        "w_ih": u(ks[1], (3 * hidden_dim, embed_dim), s),
        "w_hh": u(ks[2], (3 * hidden_dim, hidden_dim), s),
        "b_ih": u(ks[3], (3 * hidden_dim,), s),
        "b_hh": u(ks[4], (3 * hidden_dim,), s),
        "w_fc": u(ks[5], (num_classes, hidden_dim), 1.0 / jnp.sqrt(hidden_dim)),
        "b_fc": u(ks[6], (num_classes,), 1.0 / jnp.sqrt(hidden_dim)),
    }


if __name__ == "__main__":
    VOCAB, EMBED, HIDDEN, CLASSES = 100, 32, 32, 5
    B, T = 2, 8

    key = jax.random.PRNGKey(0)
    k_par, k_tok, k_len = jax.random.split(key, 3)

    params = init_params(k_par, VOCAB, EMBED, HIDDEN, CLASSES)
    token_ids = jax.random.randint(k_tok, (B, T), 0, VOCAB, dtype=jnp.int32)
    lengths = jax.random.randint(k_len, (B,), 1, T + 1, dtype=jnp.int32)

    # chunk_t=4 -> 2 time chunks, exercises the accumulator init/finalize path.
    out = text_gru_forward(token_ids, lengths, params, chunk_t=4)
    out = jax.block_until_ready(out)

    ref = text_gru_reference(token_ids, lengths, params)
    assert out.shape == (B, CLASSES)
    # Matmul operands are bf16 (f32 accumulation) per the perf review, so compare
    # against the pure-f32 reference with a correspondingly relaxed tolerance.
    assert jnp.allclose(out, ref, atol=5e-2, rtol=5e-2), (out, ref)

    print("KERNEL_OK")
</pallas_src>

<mosaic_0001>
module attributes {stable_mosaic.version = 11 : i64} {
  func.func @_gru_kernel(%arg0: i32, %arg1: i32, %arg2: memref<4x2x384xf32, #tpu.memory_space<vmem>>, %arg3: memref<2x1xi32, #tpu.memory_space<vmem>>, %arg4: memref<128x384xbf16, #tpu.memory_space<vmem>>, %arg5: memref<1x128xf32, #tpu.memory_space<vmem>>, %arg6: memref<128x128xbf16, #tpu.memory_space<vmem>>, %arg7: memref<1x128xf32, #tpu.memory_space<vmem>>, %arg8: memref<2x128xf32, #tpu.memory_space<vmem>>, %arg9: memref<2x128xf32, #tpu.memory_space<vmem>>) attributes {dimension_semantics = [#tpu.dimension_semantics<parallel>, #tpu.dimension_semantics<arbitrary>], iteration_bounds = array<i64: 1, 2>, scalar_prefetch = 0 : i64, scratch_operands = 1 : i64, tpu.core_type = #tpu.core_type<tc>, window_params = [{transform_indices = @transform_0, window_bounds = array<i64: 4, 2, 384>}, {transform_indices = @transform_1, window_bounds = array<i64: 2, 1>}, {pipeline_mode = #tpu.pipeline_mode<synchronous>, transform_indices = @transform_2, window_bounds = array<i64: 128, 384>}, {pipeline_mode = #tpu.pipeline_mode<synchronous>, transform_indices = @transform_3, window_bounds = array<i64: 1, 128>}, {pipeline_mode = #tpu.pipeline_mode<synchronous>, transform_indices = @transform_4, window_bounds = array<i64: 128, 128>}, {pipeline_mode = #tpu.pipeline_mode<synchronous>, transform_indices = @transform_5, window_bounds = array<i64: 1, 128>}, {transform_indices = @transform_6, window_bounds = array<i64: 2, 128>}]} {
    %c0_i32 = arith.constant 0 : i32
    %0 = arith.cmpi eq, %arg1, %c0_i32 : i32
    %1 = arith.extui %0 : i1 to i32
    %c0_i32_0 = arith.constant 0 : i32
    %2 = arith.cmpi ne, %1, %c0_i32_0 : i32
    scf.if %2 {
      %cst_37 = arith.constant 0.000000e+00 : f32
      %166 = vector.broadcast %cst_37 : f32 to vector<2x128xf32>
      %c0_38 = arith.constant 0 : index
      %c0_39 = arith.constant 0 : index
      %167 = vector.load %arg9[%c0_38, %c0_39] : memref<2x128xf32, #tpu.memory_space<vmem>>, vector<2x128xf32>
      tpu.vector_store %arg9[%c0_38, %c0_39], %166 {strides = array<i32>} : memref<2x128xf32, #tpu.memory_space<vmem>>, vector<2x128xf32>,
    } else {
    }
    %c0 = arith.constant 0 : index
    %c0_1 = arith.constant 0 : index
    %3 = vector.load %arg4[%c0, %c0_1] : memref<128x384xbf16, #tpu.memory_space<vmem>>, vector<128x384xbf16>
    %c0_2 = arith.constant 0 : index
    %c0_3 = arith.constant 0 : index
    %4 = vector.load %arg3[%c0_2, %c0_3] : memref<2x1xi32, #tpu.memory_space<vmem>>, vector<2x1xi32>
    %c0_4 = arith.constant 0 : index
    %c0_5 = arith.constant 0 : index
    %5 = vector.load %arg5[%c0_4, %c0_5] : memref<1x128xf32, #tpu.memory_space<vmem>>, vector<1x128xf32>
    %6 = vector.shape_cast %5 : vector<1x128xf32> to vector<1x128xf32>
    %7 = vector.broadcast %6 : vector<1x128xf32> to vector<2x128xf32>
    %c4_i32 = arith.constant 4 : i32
    %8 = arith.muli %arg1, %c4_i32 : i32
    %c0_6 = arith.constant 0 : index
    %c0_7 = arith.constant 0 : index
    %9 = vector.load %arg9[%c0_6, %c0_7] : memref<2x128xf32, #tpu.memory_space<vmem>>, vector<2x128xf32>
    %c0_i32_8 = arith.constant 0 : i32
    %10 = arith.index_cast %c0_i32_8 : i32 to index
    %c0_9 = arith.constant 0 : index
    %c0_10 = arith.constant 0 : index
    %11 = vector.load %arg2[%10, %c0_9, %c0_10] : memref<4x2x384xf32, #tpu.memory_space<vmem>>, vector<1x2x384xf32>
    %12 = vector.shape_cast %11 : vector<1x2x384xf32> to vector<2x384xf32>
    %13 = arith.truncf %9 : vector<2x128xf32> to vector<2x128xbf16>
    %cst = arith.constant dense<0.000000e+00> : vector<2x384xf32>
    %14 = tpu.matmul %13, %3, %cst {dimension_numbers = #tpu.dot_dimension_numbers<[1], [0], [0], [1], [0, 0, 1, 1], [], []>} : vector<2x128xbf16>, vector<128x384xbf16>, vector<2x384xf32> -> vector<2x384xf32>
    %15 = vector.extract_strided_slice %12 {offsets = [0, 0], sizes = [2, 128], strides = [1, 1]} : vector<2x384xf32> to vector<2x128xf32>
    %16 = vector.extract_strided_slice %14 {offsets = [0, 0], sizes = [2, 128], strides = [1, 1]} : vector<2x384xf32> to vector<2x128xf32>
    %17 = arith.addf %15, %16 : vector<2x128xf32>
    %18 = arith.negf %17 : vector<2x128xf32>
    %19 = math.exp %18 : vector<2x128xf32>
    %cst_11 = arith.constant 1.000000e+00 : f32
    %20 = vector.broadcast %cst_11 : f32 to vector<2x128xf32>
    %21 = arith.addf %20, %19 : vector<2x128xf32>
    %22 = arith.divf %20, %21 : vector<2x128xf32>
    %23 = vector.extract_strided_slice %12 {offsets = [0, 128], sizes = [2, 128], strides = [1, 1]} : vector<2x384xf32> to vector<2x128xf32>
    %24 = vector.extract_strided_slice %14 {offsets = [0, 128], sizes = [2, 128], strides = [1, 1]} : vector<2x384xf32> to vector<2x128xf32>
    %25 = arith.addf %23, %24 : vector<2x128xf32>
    %26 = arith.negf %25 : vector<2x128xf32>
    %27 = math.exp %26 : vector<2x128xf32>
    %cst_12 = arith.constant 1.000000e+00 : f32
    %28 = vector.broadcast %cst_12 : f32 to vector<2x128xf32>
    %29 = arith.addf %28, %27 : vector<2x128xf32>
    %30 = arith.divf %28, %29 : vector<2x128xf32>
    %31 = vector.extract_strided_slice %12 {offsets = [0, 256], sizes = [2, 128], strides = [1, 1]} : vector<2x384xf32> to vector<2x128xf32>
    %32 = vector.extract_strided_slice %14 {offsets = [0, 256], sizes = [2, 128], strides = [1, 1]} : vector<2x384xf32> to vector<2x128xf32>
    %33 = arith.addf %32, %7 : vector<2x128xf32>
    %34 = arith.mulf %22, %33 : vector<2x128xf32>
    %35 = arith.addf %31, %34 : vector<2x128xf32>
    %36 = math.tanh %35 : vector<2x128xf32>
    %cst_13 = arith.constant 1.000000e+00 : f32
    %37 = vector.broadcast %cst_13 : f32 to vector<2x128xf32>
    %38 = arith.subf %37, %30 : vector<2x128xf32>
    %39 = arith.mulf %38, %36 : vector<2x128xf32>
    %40 = arith.mulf %30, %9 : vector<2x128xf32>
    %41 = arith.addf %39, %40 : vector<2x128xf32>
    %42 = arith.addi %8, %c0_i32_8 : i32
    %43 = vector.broadcast %42 : i32 to vector<2x1xi32>
    %44 = arith.cmpi slt, %43, %4 : vector<2x1xi32>
    %45 = vector.shape_cast %44 : vector<2x1xi1> to vector<2x1xi1>
    %46 = vector.broadcast %45 : vector<2x1xi1> to vector<2x128xi1>
    %47 = arith.select %46, %41, %9 : vector<2x128xi1>, vector<2x128xf32>
    %c1_i32 = arith.constant 1 : i32
    %48 = arith.index_cast %c1_i32 : i32 to index
    %c0_14 = arith.constant 0 : index
    %c0_15 = arith.constant 0 : index
    %49 = vector.load %arg2[%48, %c0_14, %c0_15] : memref<4x2x384xf32, #tpu.memory_space<vmem>>, vector<1x2x384xf32>
    %50 = vector.shape_cast %49 : vector<1x2x384xf32> to vector<2x384xf32>
    %51 = arith.truncf %47 : vector<2x128xf32> to vector<2x128xbf16>
    %cst_16 = arith.constant dense<0.000000e+00> : vector<2x384xf32>
    %52 = tpu.matmul %51, %3, %cst_16 {dimension_numbers = #tpu.dot_dimension_numbers<[1], [0], [0], [1], [0, 0, 1, 1], [], []>} : vector<2x128xbf16>, vector<128x384xbf16>, vector<2x384xf32> -> vector<2x384xf32>
    %53 = vector.extract_strided_slice %50 {offsets = [0, 0], sizes = [2, 128], strides = [1, 1]} : vector<2x384xf32> to vector<2x128xf32>
    %54 = vector.extract_strided_slice %52 {offsets = [0, 0], sizes = [2, 128], strides = [1, 1]} : vector<2x384xf32> to vector<2x128xf32>
    %55 = arith.addf %53, %54 : vector<2x128xf32>
    %56 = arith.negf %55 : vector<2x128xf32>
    %57 = math.exp %56 : vector<2x128xf32>
    %cst_17 = arith.constant 1.000000e+00 : f32
    %58 = vector.broadcast %cst_17 : f32 to vector<2x128xf32>
    %59 = arith.addf %58, %57 : vector<2x128xf32>
    %60 = arith.divf %58, %59 : vector<2x128xf32>
    %61 = vector.extract_strided_slice %50 {offsets = [0, 128], sizes = [2, 128], strides = [1, 1]} : vector<2x384xf32> to vector<2x128xf32>
    %62 = vector.extract_strided_slice %52 {offsets = [0, 128], sizes = [2, 128], strides = [1, 1]} : vector<2x384xf32> to vector<2x128xf32>
    %63 = arith.addf %61, %62 : vector<2x128xf32>
    %64 = arith.negf %63 : vector<2x128xf32>
    %65 = math.exp %64 : vector<2x128xf32>
    %cst_18 = arith.constant 1.000000e+00 : f32
    %66 = vector.broadcast %cst_18 : f32 to vector<2x128xf32>
    %67 = arith.addf %66, %65 : vector<2x128xf32>
    %68 = arith.divf %66, %67 : vector<2x128xf32>
    %69 = vector.extract_strided_slice %50 {offsets = [0, 256], sizes = [2, 128], strides = [1, 1]} : vector<2x384xf32> to vector<2x128xf32>
    %70 = vector.extract_strided_slice %52 {offsets = [0, 256], sizes = [2, 128], strides = [1, 1]} : vector<2x384xf32> to vector<2x128xf32>
    %71 = arith.addf %70, %7 : vector<2x128xf32>
    %72 = arith.mulf %60, %71 : vector<2x128xf32>
    %73 = arith.addf %69, %72 : vector<2x128xf32>
    %74 = math.tanh %73 : vector<2x128xf32>
    %cst_19 = arith.constant 1.000000e+00 : f32
    %75 = vector.broadcast %cst_19 : f32 to vector<2x128xf32>
    %76 = arith.subf %75, %68 : vector<2x128xf32>
    %77 = arith.mulf %76, %74 : vector<2x128xf32>
    %78 = arith.mulf %68, %47 : vector<2x128xf32>
    %79 = arith.addf %77, %78 : vector<2x128xf32>
    %80 = arith.addi %8, %c1_i32 : i32
    %81 = vector.broadcast %80 : i32 to vector<2x1xi32>
    %82 = arith.cmpi slt, %81, %4 : vector<2x1xi32>
    %83 = vector.shape_cast %82 : vector<2x1xi1> to vector<2x1xi1>
    %84 = vector.broadcast %83 : vector<2x1xi1> to vector<2x128xi1>
    %85 = arith.select %84, %79, %47 : vector<2x128xi1>, vector<2x128xf32>
    %c2_i32 = arith.constant 2 : i32
    %86 = arith.index_cast %c2_i32 : i32 to index
    %c0_20 = arith.constant 0 : index
    %c0_21 = arith.constant 0 : index
    %87 = vector.load %arg2[%86, %c0_20, %c0_21] : memref<4x2x384xf32, #tpu.memory_space<vmem>>, vector<1x2x384xf32>
    %88 = vector.shape_cast %87 : vector<1x2x384xf32> to vector<2x384xf32>
    %89 = arith.truncf %85 : vector<2x128xf32> to vector<2x128xbf16>
    %cst_22 = arith.constant dense<0.000000e+00> : vector<2x384xf32>
    %90 = tpu.matmul %89, %3, %cst_22 {dimension_numbers = #tpu.dot_dimension_numbers<[1], [0], [0], [1], [0, 0, 1, 1], [], []>} : vector<2x128xbf16>, vector<128x384xbf16>, vector<2x384xf32> -> vector<2x384xf32>
    %91 = vector.extract_strided_slice %88 {offsets = [0, 0], sizes = [2, 128], strides = [1, 1]} : vector<2x384xf32> to vector<2x128xf32>
    %92 = vector.extract_strided_slice %90 {offsets = [0, 0], sizes = [2, 128], strides = [1, 1]} : vector<2x384xf32> to vector<2x128xf32>
    %93 = arith.addf %91, %92 : vector<2x128xf32>
    %94 = arith.negf %93 : vector<2x128xf32>
    %95 = math.exp %94 : vector<2x128xf32>
    %cst_23 = arith.constant 1.000000e+00 : f32
    %96 = vector.broadcast %cst_23 : f32 to vector<2x128xf32>
    %97 = arith.addf %96, %95 : vector<2x128xf32>
    %98 = arith.divf %96, %97 : vector<2x128xf32>
    %99 = vector.extract_strided_slice %88 {offsets = [0, 128], sizes = [2, 128], strides = [1, 1]} : vector<2x384xf32> to vector<2x128xf32>
    %100 = vector.extract_strided_slice %90 {offsets = [0, 128], sizes = [2, 128], strides = [1, 1]} : vector<2x384xf32> to vector<2x128xf32>
    %101 = arith.addf %99, %100 : vector<2x128xf32>
    %102 = arith.negf %101 : vector<2x128xf32>
    %103 = math.exp %102 : vector<2x128xf32>
    %cst_24 = arith.constant 1.000000e+00 : f32
    %104 = vector.broadcast %cst_24 : f32 to vector<2x128xf32>
    %105 = arith.addf %104, %103 : vector<2x128xf32>
    %106 = arith.divf %104, %105 : vector<2x128xf32>
    %107 = vector.extract_strided_slice %88 {offsets = [0, 256], sizes = [2, 128], strides = [1, 1]} : vector<2x384xf32> to vector<2x128xf32>
    %108 = vector.extract_strided_slice %90 {offsets = [0, 256], sizes = [2, 128], strides = [1, 1]} : vector<2x384xf32> to vector<2x128xf32>
    %109 = arith.addf %108, %7 : vector<2x128xf32>
    %110 = arith.mulf %98, %109 : vector<2x128xf32>
    %111 = arith.addf %107, %110 : vector<2x128xf32>
    %112 = math.tanh %111 : vector<2x128xf32>
    %cst_25 = arith.constant 1.000000e+00 : f32
    %113 = vector.broadcast %cst_25 : f32 to vector<2x128xf32>
    %114 = arith.subf %113, %106 : vector<2x128xf32>
    %115 = arith.mulf %114, %112 : vector<2x128xf32>
    %116 = arith.mulf %106, %85 : vector<2x128xf32>
    %117 = arith.addf %115, %116 : vector<2x128xf32>
    %118 = arith.addi %8, %c2_i32 : i32
    %119 = vector.broadcast %118 : i32 to vector<2x1xi32>
    %120 = arith.cmpi slt, %119, %4 : vector<2x1xi32>
    %121 = vector.shape_cast %120 : vector<2x1xi1> to vector<2x1xi1>
    %122 = vector.broadcast %121 : vector<2x1xi1> to vector<2x128xi1>
    %123 = arith.select %122, %117, %85 : vector<2x128xi1>, vector<2x128xf32>
    %c3_i32 = arith.constant 3 : i32
    %124 = arith.index_cast %c3_i32 : i32 to index
    %c0_26 = arith.constant 0 : index
    %c0_27 = arith.constant 0 : index
    %125 = vector.load %arg2[%124, %c0_26, %c0_27] : memref<4x2x384xf32, #tpu.memory_space<vmem>>, vector<1x2x384xf32>
    %126 = vector.shape_cast %125 : vector<1x2x384xf32> to vector<2x384xf32>
    %127 = arith.truncf %123 : vector<2x128xf32> to vector<2x128xbf16>
    %cst_28 = arith.constant dense<0.000000e+00> : vector<2x384xf32>
    %128 = tpu.matmul %127, %3, %cst_28 {dimension_numbers = #tpu.dot_dimension_numbers<[1], [0], [0], [1], [0, 0, 1, 1], [], []>} : vector<2x128xbf16>, vector<128x384xbf16>, vector<2x384xf32> -> vector<2x384xf32>
    %129 = vector.extract_strided_slice %126 {offsets = [0, 0], sizes = [2, 128], strides = [1, 1]} : vector<2x384xf32> to vector<2x128xf32>
    %130 = vector.extract_strided_slice %128 {offsets = [0, 0], sizes = [2, 128], strides = [1, 1]} : vector<2x384xf32> to vector<2x128xf32>
    %131 = arith.addf %129, %130 : vector<2x128xf32>
    %132 = arith.negf %131 : vector<2x128xf32>
    %133 = math.exp %132 : vector<2x128xf32>
    %cst_29 = arith.constant 1.000000e+00 : f32
    %134 = vector.broadcast %cst_29 : f32 to vector<2x128xf32>
    %135 = arith.addf %134, %133 : vector<2x128xf32>
    %136 = arith.divf %134, %135 : vector<2x128xf32>
    %137 = vector.extract_strided_slice %126 {offsets = [0, 128], sizes = [2, 128], strides = [1, 1]} : vector<2x384xf32> to vector<2x128xf32>
    %138 = vector.extract_strided_slice %128 {offsets = [0, 128], sizes = [2, 128], strides = [1, 1]} : vector<2x384xf32> to vector<2x128xf32>
    %139 = arith.addf %137, %138 : vector<2x128xf32>
    %140 = arith.negf %139 : vector<2x128xf32>
    %141 = math.exp %140 : vector<2x128xf32>
    %cst_30 = arith.constant 1.000000e+00 : f32
    %142 = vector.broadcast %cst_30 : f32 to vector<2x128xf32>
    %143 = arith.addf %142, %141 : vector<2x128xf32>
    %144 = arith.divf %142, %143 : vector<2x128xf32>
    %145 = vector.extract_strided_slice %126 {offsets = [0, 256], sizes = [2, 128], strides = [1, 1]} : vector<2x384xf32> to vector<2x128xf32>
    %146 = vector.extract_strided_slice %128 {offsets = [0, 256], sizes = [2, 128], strides = [1, 1]} : vector<2x384xf32> to vector<2x128xf32>
    %147 = arith.addf %146, %7 : vector<2x128xf32>
    %148 = arith.mulf %136, %147 : vector<2x128xf32>
    %149 = arith.addf %145, %148 : vector<2x128xf32>
    %150 = math.tanh %149 : vector<2x128xf32>
    %cst_31 = arith.constant 1.000000e+00 : f32
    %151 = vector.broadcast %cst_31 : f32 to vector<2x128xf32>
    %152 = arith.subf %151, %144 : vector<2x128xf32>
    %153 = arith.mulf %152, %150 : vector<2x128xf32>
    %154 = arith.mulf %144, %123 : vector<2x128xf32>
    %155 = arith.addf %153, %154 : vector<2x128xf32>
    %156 = arith.addi %8, %c3_i32 : i32
    %157 = vector.broadcast %156 : i32 to vector<2x1xi32>
    %158 = arith.cmpi slt, %157, %4 : vector<2x1xi32>
    %159 = vector.shape_cast %158 : vector<2x1xi1> to vector<2x1xi1>
    %160 = vector.broadcast %159 : vector<2x1xi1> to vector<2x128xi1>
    %161 = arith.select %160, %155, %123 : vector<2x128xi1>, vector<2x128xf32>
    %c4_i32_32 = arith.constant 4 : i32
    %c0_33 = arith.constant 0 : index
    %c0_34 = arith.constant 0 : index
    %162 = vector.load %arg9[%c0_33, %c0_34] : memref<2x128xf32, #tpu.memory_space<vmem>>, vector<2x128xf32>
    tpu.vector_store %arg9[%c0_33, %c0_34], %161 {strides = array<i32>} : memref<2x128xf32, #tpu.memory_space<vmem>>, vector<2x128xf32>,
    %c1_i32_35 = arith.constant 1 : i32
    %163 = arith.cmpi eq, %arg1, %c1_i32_35 : i32
    %164 = arith.extui %163 : i1 to i32
    %c0_i32_36 = arith.constant 0 : i32
    %165 = arith.cmpi ne, %164, %c0_i32_36 : i32
    scf.if %165 {
      %c0_37 = arith.constant 0 : index
      %c0_38 = arith.constant 0 : index
      %166 = vector.load %arg9[%c0_37, %c0_38] : memref<2x128xf32, #tpu.memory_space<vmem>>, vector<2x128xf32>
      %167 = arith.truncf %166 : vector<2x128xf32> to vector<2x128xbf16>
      %c0_39 = arith.constant 0 : index
      %c0_40 = arith.constant 0 : index
      %168 = vector.load %arg6[%c0_39, %c0_40] : memref<128x128xbf16, #tpu.memory_space<vmem>>, vector<128x128xbf16>
      %cst_41 = arith.constant dense<0.000000e+00> : vector<2x128xf32>
      %169 = tpu.matmul %167, %168, %cst_41 {dimension_numbers = #tpu.dot_dimension_numbers<[1], [0], [0], [1], [0, 0, 1, 1], [], []>} : vector<2x128xbf16>, vector<128x128xbf16>, vector<2x128xf32> -> vector<2x128xf32>
      %c0_42 = arith.constant 0 : index
      %c0_43 = arith.constant 0 : index
      %170 = vector.load %arg7[%c0_42, %c0_43] : memref<1x128xf32, #tpu.memory_space<vmem>>, vector<1x128xf32>
      %171 = vector.broadcast %170 : vector<1x128xf32> to vector<2x128xf32>
      %172 = arith.addf %169, %171 : vector<2x128xf32>
      %c0_44 = arith.constant 0 : index
      %c0_45 = arith.constant 0 : index
      %173 = vector.load %arg8[%c0_44, %c0_45] : memref<2x128xf32, #tpu.memory_space<vmem>>, vector<2x128xf32>
      tpu.vector_store %arg8[%c0_44, %c0_45], %172 {strides = array<i32>} : memref<2x128xf32, #tpu.memory_space<vmem>>, vector<2x128xf32>,
    } else {
    }
    return
  }
  func.func @transform_0(%arg0: i32, %arg1: i32) -> (i32, i32, i32) {
    %c0_i32 = arith.constant 0 : i32
    %c0_i32_0 = arith.constant 0 : i32
    return %arg1, %arg0, %c0_i32 : i32, i32, i32
  }
  func.func @transform_1(%arg0: i32, %arg1: i32) -> (i32, i32) {
    %c0_i32 = arith.constant 0 : i32
    %c0_i32_0 = arith.constant 0 : i32
    return %arg0, %c0_i32 : i32, i32
  }
  func.func @transform_2(%arg0: i32, %arg1: i32) -> (i32, i32) {
    %c0_i32 = arith.constant 0 : i32
    %c0_i32_0 = arith.constant 0 : i32
    %c0_i32_1 = arith.constant 0 : i32
    return %c0_i32, %c0_i32_0 : i32, i32
  }
  func.func @transform_3(%arg0: i32, %arg1: i32) -> (i32, i32) {
    %c0_i32 = arith.constant 0 : i32
    %c0_i32_0 = arith.constant 0 : i32
    %c0_i32_1 = arith.constant 0 : i32
    return %c0_i32, %c0_i32_0 : i32, i32
  }
  func.func @transform_4(%arg0: i32, %arg1: i32) -> (i32, i32) {
    %c0_i32 = arith.constant 0 : i32
    %c0_i32_0 = arith.constant 0 : i32
    %c0_i32_1 = arith.constant 0 : i32
    return %c0_i32, %c0_i32_0 : i32, i32
  }
  func.func @transform_5(%arg0: i32, %arg1: i32) -> (i32, i32) {
    %c0_i32 = arith.constant 0 : i32
    %c0_i32_0 = arith.constant 0 : i32
    %c0_i32_1 = arith.constant 0 : i32
    return %c0_i32, %c0_i32_0 : i32, i32
  }
  func.func @transform_6(%arg0: i32, %arg1: i32) -> (i32, i32) {
    %c0_i32 = arith.constant 0 : i32
    %c0_i32_0 = arith.constant 0 : i32
    return %arg0, %c0_i32 : i32, i32
  }
}

</mosaic_0001>

<bundles_post_ra>
// kernel: tpu_custom_call.1
= control target key start
LH: loop header
LB: loop body
LE: loop exit
PB: predicated region body
PF: predicated region fallthrough
CT: control target
= control target key end

     0   :  { %11 = vsyncpa [#allocation4], 0  ;;  %s2521_s0 = inlined_call_operand.hbm [shape: f32[8,2,384], index: 0, kind: input, shape index: {}]   ;;  %s2522_s1 = inlined_call_operand.hbm [shape: s32[2,1], index: 1, kind: input, shape index: {}]   ;;  %s2523_s2 = inlined_call_operand.hbm [shape: bf16[128,384], index: 2, kind: input, shape index: {}]   ;;  %s2524_s3 = inlined_call_operand.hbm [shape: f32[1,128], index: 3, kind: input, shape index: {}]   ;;  %s2525_s4 = inlined_call_operand.hbm [shape: bf16[128,128], index: 4, kind: input, shape index: {}]   ;;  %s2526_s5 = inlined_call_operand.hbm [shape: f32[1,128], index: 5, kind: input, shape index: {}]   ;;  %s2527_s6 = inlined_call_operand.hbm [shape: f32[2,128], index: 6, kind: output, shape index: {}]  }
   0x1   :  { %13 = vsyncpa [#allocation4 + $0x1], 0 }
   0x2   :  { %14 = vsyncpa [#allocation7], 0 }
   0x3   :  { %15 = vsyncpa [#allocation10], 0 }
   0x4   :  { %16 = vsyncpa [#allocation13], 0 }
   0x5   :  { %17 = vsyncpa [#allocation5], 0  ;;  %s1993_s21 = smov 0   ;;  %s1995_s22 = smov 0  }
   0x6   :  { %s1997_s23 = smov 0   ;;  %s1999_s24 = smov 0  }
   0x7   :  { %s2001_s25 = smov 0   ;;  %s2003_s26 = smov 0  }
   0x8 LB: > { %s2531_s27 = sadd.s32 4294967295, %s1937_s26   ;;  %p1252_p0 = scmp.ge.s32.totalorder %s1937_s26, 1  ;;  %s1937_s26 = sphi %s2003_s26, %s23_s26   ;;  %s1933_s25 = sphi %s2001_s25, %s2547_s25   ;;  %s1929_s24 = sphi %s1999_s24, %s2546_s24   ;;  %s1925_s23 = sphi %s1997_s23, %s2545_s23   ;;  %s1921_s22 = sphi %s1995_s22, %s2544_s22   ;;  %s1917_s21 = sphi %s1993_s21, %s2543_s21  }
   0x9   : > { %p2027_p1 = scmp.eq.s32.totalorder %s2531_s27, 0  ;;  %p204_p2 = scmp.lt.s32.totalorder %s1937_s26, 3 }
   0xa   : > { %s1939_s30 = smov [#allocation6]   ;;  %s1940_s8 = smov [#allocation9]  }
   0xb   : > { %s2532_s28 = scalar_select %p2027_p1, 1, 0 }
   0xc   : > { %p2032_p3 = pnand %p1252_p0, %p204_p2  ;;  %s219_s7 = sshll.u32 %s1939_s30, 4  ;;  %s220_s7 = int_to_ptr.vmem [resolvable:$true] %s219_s7 }
   0xd   : > { %s243_s9 = sshll.u32 %s1940_s8, 4  ;;  %s1941_s11 = smov [#allocation8]   ;;  %s2044_s9 = int_to_ptr.vmem [resolvable:$true] %s243_s9 }
   0xe   : > { %s2533_s29 = scalar_select %p2032_p3, 1, 0 }
   0xf   : > { %p1494_p4 = pneg %p2032_p3  ;;  %s229_s12 = sshll.u32 %s1941_s11, 4  ;;  %s2046_s12 = int_to_ptr.vmem [resolvable:$true] %s229_s12 }
  0x10   : > { %s1675_s15 = scalar_lea.hbm %s2522_s1, 32 }
  0x11   : > { %p2040_p5 = pnand %p1494_p4, %p2027_p1  ;;  %p1676_p6 = scmp.ne.s32.totalorder %s2522_s1, %s1675_s15 }
  0x12   : > { %p1682_p10 = scmp.lt.u32.totalorder %s1675_s15, %s2522_s1 }
  0x13   : > { %p2056_p7 = pneg %p2040_p5 }
  0x15   : > { %p1678_p8 = pnand %p2056_p7, %p1676_p6 }
  0x17   : > { %p1679_p9 = pneg %p1678_p8 }
  0x19   : > { %p1684_p11 = pnand %p1682_p10, %p1679_p9 }
  0x1b   : > { %1687 = shalt.err (!%p1684_p11)
}
  0x1c   : > { %s1688_s30 = scalar_lea.vmem %s220_s7, 32  ;;  %p1696_p2 = scmp.lt.s32.totalorder %s220_s7, %s220_s7 }
  0x1d   : > { %p1689_p12 = scmp.ne.s32.totalorder %s220_s7, %s1688_s30  ;;  %p1697_p4 = scmp.lt.s32.totalorder %s1688_s30, %s1688_s30 }
  0x1f   : > { %p1691_p13 = pnand %p1689_p12, %p2056_p7  ;;  %p1698_p3 = por %p1697_p4, %p1696_p2 }
  0x21   : > { %p1692_p0 = pneg %p1691_p13 }
  0x23   : > { %p1699_p1 = pnand %p1698_p3, %p1692_p0 }
  0x25   : > { %1702 = shalt.err (!%p1699_p1)
}
  0x26   : > { %1497 = dma.hbm_to_vmem [thread:$0]  (!%p2040_p5), %s2522_s1, 32, %s220_s7, [#allocation7]  }
  0x27   : > { %s1703_s15 = scalar_lea.hbm %s2524_s3, 16 }
  0x28   : > { %p1704_p6 = scmp.ne.s32.totalorder %s2524_s3, %s1703_s15  ;;  %p1710_p1 = scmp.lt.u32.totalorder %s1703_s15, %s2524_s3 }
  0x2a   : > { %p1706_p8 = pnand %p1704_p6, %p2056_p7 }
  0x2c   : > { %p1707_p9 = pneg %p1706_p8 }
  0x2e   : > { %p1712_p3 = pnand %p1710_p1, %p1707_p9 }
  0x30   : > { %1715 = shalt.err (!%p1712_p3)
}
  0x31   : > { %s1716_s7 = scalar_lea.vmem %s2044_s9, 16  ;;  %s1723_s30 = scalar_lea.vmem %s2044_s9, 32 }
  0x32   : > { %p1717_p10 = scmp.ne.s32.totalorder %s2044_s9, %s1716_s7  ;;  %p1724_p13 = scmp.lt.s32.totalorder %s2044_s9, %s2044_s9 }
  0x33   : > { %p1725_p0 = scmp.lt.s32.totalorder %s1723_s30, %s1716_s7 }
  0x34   : > { %p1719_p11 = pnand %p1717_p10, %p2056_p7 }
  0x35   : > { %p1726_p2 = por %p1725_p0, %p1724_p13 }
  0x36   : > { %p1720_p12 = pneg %p1719_p11 }
  0x38   : > { %p1727_p4 = pnand %p1726_p2, %p1720_p12 }
  0x3a   : > { %1730 = shalt.err (!%p1727_p4)
}
  0x3b   : > { %1503 = dma.hbm_to_vmem [thread:$0]  (!%p2040_p5), %s2524_s3, 16, %s2044_s9, [#allocation10]  }
  0x3c   : > { %s1731_s15 = scalar_lea.hbm %s2523_s2, 3072 }
  0x3d   : > { %p1732_p6 = scmp.ne.s32.totalorder %s2523_s2, %s1731_s15  ;;  %p1738_p1 = scmp.lt.u32.totalorder %s1731_s15, %s2523_s2 }
  0x3f   : > { %p1734_p8 = pnand %p1732_p6, %p2056_p7 }
  0x41   : > { %p1735_p9 = pneg %p1734_p8 }
  0x43   : > { %p1740_p3 = pnand %p1738_p1, %p1735_p9 }
  0x45   : > { %1743 = shalt.err (!%p1740_p3)
}
  0x46   : > { %s1744_s9 = scalar_lea.vmem %s2046_s12, 3072  ;;  %p1752_p13 = scmp.lt.s32.totalorder %s2046_s12, %s2046_s12 }
  0x47   : > { %p1745_p10 = scmp.ne.s32.totalorder %s2046_s12, %s1744_s9  ;;  %p1753_p0 = scmp.lt.s32.totalorder %s1744_s9, %s1744_s9 }
  0x49   : > { %p1747_p11 = pnand %p1745_p10, %p2056_p7  ;;  %p1754_p2 = por %p1753_p0, %p1752_p13 }
  0x4b   : > { %p1748_p12 = pneg %p1747_p11 }
  0x4d   : > { %p1755_p4 = pnand %p1754_p2, %p1748_p12 }
  0x4f   : > { %1758 = shalt.err (!%p1755_p4)
}
  0x50   : > { %s1942_s7 = smov 192   ;;  %s1943_s30 = smov 12  }
  0x51   : > { %1500 = dma.hbm_to_vmem [thread:$0]  (!%p2040_p5), %s2523_s2, 3072, %s2046_s12, [#allocation7], %s1942_s7, %s1942_s7, %s1943_s30  }
  0x52   : > { %s1944_s13 = smov [#allocation11]   ;;  %s1759_s17 = scalar_lea.hbm %s2525_s4, 1024 }
  0x53   : > { %s253_s14 = sshll.u32 %s1944_s13, 4  ;;  %p1760_p6 = scmp.ne.s32.totalorder %s2525_s4, %s1759_s17  ;;  %s254_s14 = int_to_ptr.vmem [resolvable:$true] %s253_s14 }
  0x54   : > { %p1766_p1 = scmp.lt.u32.totalorder %s1759_s17, %s2525_s4 }
  0x55   : > { %p1762_p8 = pnand %p1760_p6, %p2056_p7 }
  0x57   : > { %p1763_p9 = pneg %p1762_p8 }
  0x59   : > { %p1768_p3 = pnand %p1766_p1, %p1763_p9 }
  0x5b   : > { %1771 = shalt.err (!%p1768_p3)
}
  0x5c   : > { %s1772_s12 = scalar_lea.vmem %s254_s14, 1024  ;;  %p1780_p13 = scmp.lt.s32.totalorder %s254_s14, %s254_s14 }
  0x5d   : > { %p1773_p10 = scmp.ne.s32.totalorder %s254_s14, %s1772_s12  ;;  %p1781_p0 = scmp.lt.s32.totalorder %s1772_s12, %s1772_s12 }
  0x5f   : > { %p1775_p11 = pnand %p1773_p10, %p2056_p7  ;;  %p1782_p2 = por %p1781_p0, %p1780_p13 }
  0x61   : > { %p1776_p12 = pneg %p1775_p11 }
  0x63   : > { %p1783_p4 = pnand %p1782_p2, %p1776_p12 }
  0x65   : > { %1786 = shalt.err (!%p1783_p4)
}
  0x66   : > { %s1945_s7 = smov 64   ;;  %s1946_s30 = smov 4  }
  0x67   : > { %1506 = dma.hbm_to_vmem [thread:$0]  (!%p2040_p5), %s2525_s4, 1024, %s254_s14, [#allocation10], %s1945_s7, %s1945_s7, %s1946_s30  }
  0x68   : > { %s1947_s11 = smov [#allocation12]   ;;  %s1787_s17 = scalar_lea.hbm %s2526_s5, 16 }
  0x69   : > { %s267_s13 = sshll.u32 %s1947_s11, 4  ;;  %p1788_p6 = scmp.ne.s32.totalorder %s2526_s5, %s1787_s17  ;;  %s268_s13 = int_to_ptr.vmem [resolvable:$true] %s267_s13 }
  0x6a   : > { %p1794_p1 = scmp.lt.u32.totalorder %s1787_s17, %s2526_s5 }
  0x6b   : > { %p1790_p8 = pnand %p1788_p6, %p2056_p7 }
  0x6d   : > { %p1791_p9 = pneg %p1790_p8 }
  0x6f   : > { %p1796_p3 = pnand %p1794_p1, %p1791_p9 }
  0x71   : > { %1799 = shalt.err (!%p1796_p3)
}
  0x72   : > { %s1800_s14 = scalar_lea.vmem %s268_s13, 16  ;;  %s1807_s7 = scalar_lea.vmem %s268_s13, 32 }
  0x73   : > { %p1801_p10 = scmp.ne.s32.totalorder %s268_s13, %s1800_s14  ;;  %p1808_p13 = scmp.lt.s32.totalorder %s268_s13, %s268_s13 }
  0x74   : > { %p1809_p0 = scmp.lt.s32.totalorder %s1807_s7, %s1800_s14 }
  0x75   : > { %p1803_p11 = pnand %p1801_p10, %p2056_p7 }
  0x76   : > { %p1810_p2 = por %p1809_p0, %p1808_p13 }
  0x77   : > { %p1804_p12 = pneg %p1803_p11 }
  0x79   : > { %p1811_p4 = pnand %p1810_p2, %p1804_p12 }
  0x7b   : > { %1814 = shalt.err (!%p1811_p4)
}
  0x7c   : > { %1509 = dma.hbm_to_vmem [thread:$0]  (!%p2040_p5), %s2526_s5, 16, %s268_s13, [#allocation13]  }
  0x7d   : > { %s32_s18 = sadd.s32 1, %s1933_s25  ;;  %s44_s10 = sadd.s32 1, %s1925_s23 }
  0x7e   : > { %p33_p7 = scmp.ge.s32.totalorder %s32_s18, 2  ;;  %p51_p6 = scmp.ne.s32.totalorder %s1925_s23, %s1921_s22 }
  0x7f   : > { %p52_p8 = scmp.eq.s32.totalorder %s1937_s26, 0  ;;  %p57_p1 = scmp.ne.s32.totalorder %s1921_s22, %s1917_s21 }
  0x80   : > { %s2549_s18 = smov (%p33_p7, %s32_s18), 0  ;;  %p1519_p3 = scmp.lt.s32.totalorder %s1937_s26, 2 }
  0x81   : > { %p53_p9 = por %p52_p8, %p51_p6  ;;  %s39_s8 = ssub.s32 %s1933_s25, %s2549_s18 }
  0x82   : > { %p42_p10 = scmp.eq.s32.totalorder %s39_s8, 0  ;;  %p2536_p11 = scmp.ne.s32.totalorder %s2532_s28, 0 }
  0x83   : > { %s278_s15 = sand.u32 1, %s1925_s23   ;;  %s1466_s13 = smul.u32 384, %s1933_s25 }
  0x84   : > { %p2169_p12 = por %p2536_p11, %p57_p1  ;;  %s1465_s17 = smul.u32 24, %s278_s15 }
  0x85   : > { %s2176_s16 = scalar_select %p42_p10, %s1925_s23, %s44_s10  }
  0x86   : > { %s2181_s9 = scalar_lea.hbm %s2521_s0, %s1466_s13  ;;  %p2183_p5 = pnand %p1519_p3, %p53_p9 }
  0x87   : > { %s282_s12 = scalar_lea.vmem [#allocation3], %s1465_s17  ;;  %s2189_s7 = scalar_lea.sflag [#allocation4], %s278_s15 }
  0x88   : > { %s292_s14 = sshll.u32 %s282_s12, 4  ;;  %s1815_s30 = scalar_lea.hbm %s2181_s9, 384  ;;  %s2187_s14 = int_to_ptr.vmem [resolvable:$true] %s292_s14 }
  0x89   : > { %p1816_p13 = scmp.ne.s32.totalorder %s2181_s9, %s1815_s30  ;;  %p1817_p0 = pneg %p2183_p5 }
  0x8a   : > { %s1820_s8 = scalar_lea.hbm %s2521_s0, 768  ;;  %p1821_p7 = scmp.lt.u32.totalorder %s2181_s9, %s2521_s0 }
  0x8b   : > { %p1818_p2 = pnand %p1817_p0, %p1816_p13  ;;  %p1822_p6 = scmp.lt.u32.totalorder %s1820_s8, %s1815_s30 }
  0x8c   : > { %p1824_p9 = scmp.lt.u32.totalorder %s1815_s30, %s2181_s9 }
  0x8d   : > { %p1819_p4 = pneg %p1818_p2  ;;  %p1823_p8 = por %p1822_p6, %p1821_p7 }
  0x8f   : > { %p1825_p1 = por %p1824_p9, %p1823_p8 }
  0x91   : > { %p1826_p3 = pnand %p1825_p1, %p1819_p4 }
  0x93   : > { %1829 = shalt.err (!%p1826_p3)
}
  0x94   : > { %s1830_s15 = scalar_lea.vmem %s2187_s14, 384  ;;  %s1948_s17 = smov [#allocation3]  }
  0x95   : > { %p1831_p10 = scmp.ne.s32.totalorder %s2187_s14, %s1830_s15  ;;  %s1835_s20 = sshll.u32 %s1948_s17, 4  ;;  %s1836_s20 = int_to_ptr.vmem [resolvable:$false] %s1835_s20 }
  0x96   : > { %s1837_s12 = scalar_lea.vmem %s1836_s20, 768  ;;  %p1838_p2 = scmp.lt.s32.totalorder %s2187_s14, %s1836_s20 }
  0x97   : > { %p1833_p11 = pnand %p1831_p10, %p1817_p0  ;;  %p1839_p7 = scmp.lt.s32.totalorder %s1837_s12, %s1830_s15 }
  0x99   : > { %p1834_p13 = pneg %p1833_p11  ;;  %p1840_p6 = por %p1839_p7, %p1838_p2 }
  0x9b   : > { %p1841_p8 = pnand %p1840_p6, %p1834_p13 }
  0x9d   : > { %1844 = shalt.err (!%p1841_p8)
}
  0x9e   : > { %s1949_s30 = smov 96   ;;  %s1950_s27 = smov 6  }
  0x9f   : > { %1513 = dma.hbm_to_vmem [thread:$0]  (!%p2183_p5), %s2181_s9, 384, %s2187_s14, %s2189_s7, %s1949_s30, %s1949_s30, %s1950_s27  }
  0xa0   : > { %p2539_p0 = scmp.ne.s32.totalorder %s2533_s29, 0 }
  0xa1   : > { %s306_s10 = sand.u32 (!%p2539_p0), 1, %s1921_s22  }
  0xa2   : > { %304 = sbr.rel (%p2539_p0) target bundleno = 1516 (0x5ec), region = 44  ;;  %s307_s13 = scalar_lea.sflag (!%p2539_p0), [#allocation4], %s306_s10 }
  0xa3   : > { %s1467_s8 = smul.u32 (!%p2539_p0), 24, %s306_s10 }
  0xa5   : > { %s2220_s19 = scalar_lea.vmem (!%p2539_p0), [#allocation3], %s1467_s8 }
  0xa9   : > { %1896 = dma.done.wait (%p2169_p12), %s307_s13, 384  }
  0xaa   : > { %1898 = vsyncadd (%p2169_p12), %s307_s13, 4294966912  ;;  %p2540_p4 = scmp.ne.s32.totalorder %s2532_s28, 0 }
  0xac   : > { %1900 = dma.done.wait (%p2540_p4), [#allocation7], 3104  }
  0xad   : > { %1902 = vsyncadd (%p2540_p4), [#allocation7], 4294964192 }
  0xae   : > { %1904 = dma.done.wait (%p2540_p4), [#allocation10], 1040  }
  0xaf   : > { %1906 = vsyncadd (%p2540_p4), [#allocation10], 4294966256 }
  0xb0   : > { %1908 = dma.done.wait (%p2540_p4), [#allocation13], 16  }
  0xb1   : > { %1910 = vsyncadd (%p2540_p4), [#allocation13], 4294967280  ;;  %p1268_p12 = scmp.ne.s32.totalorder %s1929_s24, 0 }
  0xb2   : > { %v1951_v0 = vmov (!%p1268_p12), 0.0  }
  0xb3   : > { %359 = sbr.rel (%p1268_p12) target bundleno = 186 (0xba), region = 72  ;;  %360 = vst [vmem:[#allocation2] sm:$0x3] (!%p1268_p12), %v1951_v0 }
  0xba PF: > { %v2239_v1 = vld [vmem:[#allocation8 + $0x4] ss:$12 sps:$4 sm:$0xff]   ;;  %v2241_v2 = vld [vmem:[#allocation8] ss:$12 sps:$4 sm:$0xff]   ;;  %v1952_v3 = vmov 0.0   ;;  %v1953_v4 = vmov 0  }
  0xbb   : > { %1365 = vmatprep.subr.bf16.mxu1 %v1952_v3  ;;  %565 = vmatprep.mubr.bf16.mxu0 %v1953_v4  ;;  %v2246_v5 = vld [vmem:[#allocation8 + $0x1c] ss:$12 sps:$4 sm:$0xff]   ;;  %vm1954_vm0 = vmmov 0   ;;  %v2251_v6 = vld [vmem:[#allocation8 + $0x18] ss:$12 sps:$4 sm:$0xff]   ;;  %s2277_s28 = sshll.u32 %s1929_s24, 2 }
  0xbc   : > { %533 = vmatprep.subr.bf16.mxu0 %v2239_v1  ;;  %1381 = vmatprep.mubr.msk.bf16.mxu1 %vm1954_vm0, %v1952_v3  ;;  %v2255_v7 = vld [vmem:[#allocation8 + $0x34] ss:$12 sps:$4 sm:$0xff]   ;;  %v2259_v8 = vld [vmem:[#allocation8 + $0x30] ss:$12 sps:$4 sm:$0xff]   ;;  %v2262_v9 = vld [vmem:[#allocation8 + $0x4c] ss:$12 sps:$4 sm:$0xff]   ;;  %v641_v17 = vstv %s2277_s28 }
  0xbd   : > { %534 = vmatpush1.bf16.msra.mxu0 %v2241_v2  ;;  %1593 = vset.pattern.permute.xlu0 %v1953_v4  ;;  %v2264_v10 = vld [vmem:[#allocation8 + $0x8] ss:$12 sps:$4 sm:$0xff]   ;;  %v2271_v12 = vld [vmem:[#allocation8 + $0x64] ss:$12 sps:$4 sm:$0xff]   ;;  %v2274_v13 = vld [vmem:[#allocation8 + $0x20] ss:$12 sps:$4 sm:$0xff]  }
  0xbe   : > { %535 = vmatprep.subr.bf16.mxu0 %v2246_v5  ;;  %1594 = vset.pattern.permute.xlu1 %v1953_v4  ;;  %v2267_v11 = vld [vmem:[#allocation8 + $0x48] ss:$12 sps:$4 sm:$0xff]   ;;  %s760_s29 = sadd.s32 1, %s2277_s28  ;;  %v2280_v14 = vld [vmem:[#allocation8 + $0x60] ss:$12 sps:$4 sm:$0xff]   ;;  %s880_s11 = sadd.s32 2, %s2277_s28 }
  0xbf   : > { %1366 = vmatpush3.bf16.msra.mxu1 %v2264_v10  ;;  %v2284_v15 = vld [vmem:[#allocation8 + $0x38] ss:$12 sps:$4 sm:$0xff]   ;;  %v2287_v16 = vld [vmem:[#allocation8 + $0x7c] ss:$12 sps:$4 sm:$0xff]   ;;  %v761_v18 = vstv %s760_s29  ;;  %v2300_v22 = vld [vmem:[#allocation8 + $0x94] ss:$12 sps:$4 sm:$0xff]  }
  0xc0   : > { %1367 = vmatprep.subr.bf16.mxu1 %v1952_v3  ;;  %v2292_v19 = vld [vmem:[#allocation8 + $0x78] ss:$12 sps:$4 sm:$0xff]   ;;  %v2295_v20 = vld [vmem:[#allocation8 + $0x50] ss:$12 sps:$4 sm:$0xff]   ;;  %v2310_v25 = vld [vmem:[#allocation8 + $0x68] ss:$12 sps:$4 sm:$0xff]  }
  0xc1   : > { %536 = vmatpush1.bf16.msra.mxu0 %v2251_v6  ;;  %v2297_v21 = vld [vmem:[#allocation6] sm:$0x3]  ;;  %v2314_v27 = vld [vmem:[#allocation8 + $0xac] ss:$12 sps:$4 sm:$0xff]   ;;  %v2318_v28 = vld [vmem:[#allocation8 + $0xa8] ss:$12 sps:$4 sm:$0xff]  }
  0xc2   : > { %537 = vmatprep.subr.bf16.mxu0 %v2255_v7  ;;  %vm642_vm1 = vcmp.lt.s32.totalorder %v641_v17, %v2297_v21  ;;  %vm762_vm2 = vcmp.lt.s32.totalorder %v761_v18, %v2297_v21  ;;  %v2307_v24 = vld [vmem:[#allocation8 + $0x90] ss:$12 sps:$4 sm:$0xff]   ;;  %v2320_v29 = vld [vmem:[#allocation2] sm:$0x3]  ;;  %v2331_v32 = vld [vmem:[#allocation8 + $0x98] ss:$12 sps:$4 sm:$0xff]  }
  0xc3   : > { %1368 = vmatpush3.bf16.msra.mxu1 %v2274_v13  ;;  %v643_v23 = vsel %vm642_vm1, 1, %v1953_v4  ;;  %v763_v26 = vsel %vm762_vm2, 1, %v1953_v4  ;;  %v2323_v30 = vld [vmem:[#allocation8 + $0x80] ss:$12 sps:$4 sm:$0xff]   ;;  %v404_v31 = vpack.c.bf16 %v2320_v29, %v2320_v29  ;;  %v2336_v33 = vld [vmem:[#allocation8 + $0xb0] ss:$12 sps:$4 sm:$0xff]  }
  0xc4   : > { %1369 = vmatprep.subr.bf16.mxu1 %v1952_v3  ;;  %645 = vperm.xlu0 %1593, %v643_v23   ;;  %v403_v34 = vld [vmem:[%s2220_s19] sm:$0x3f]  ;;  %v2377_v51 = vld [vmem:[#allocation9] ss:$0 sm:$0xff]  ;;  %s1000_s9 = sadd.s32 3, %s2277_s28  ;;  %v881_v23 = vstv %s880_s11  ;;  %p1306_p5 = scmp.ne.s32.totalorder %s1929_s24, 1 }
  0xc5   : > { %538 = vmatpush1.bf16.msra.mxu0 %v2259_v8  ;;  %v622_v36 = vrot.slane %v403_v34, 2  ;;  %v633_v54 = vrot.slane %v403_v34, 4  ;;  %vm882_vm4 = vcmp.lt.s32.totalorder %v881_v23, %v2297_v21  ;;  %vm1956_vm9 = vmmov (!%p1306_p5), 0  }
  0xc6   : > { %539 = vmatprep.subr.bf16.mxu0 %v2262_v9 }
  0xc7   : > { %1370 = vmatpush3.bf16.msra.mxu1 %v2284_v15 }
  0xc8   : > { %1371 = vmatprep.subr.bf16.mxu1 %v1952_v3  ;;  %765 = vperm.xlu0 %1593, %v763_v26   ;;  %v1001_v26 = vstv %s1000_s9 }
  0xc9   : > { %540 = vmatpush1.bf16.msra.mxu0 %v2267_v11  ;;  %vm1002_vm5 = vcmp.lt.s32.totalorder %v1001_v26, %v2297_v21 }
  0xca   : > { %541 = vmatprep.subr.bf16.mxu0 %v2271_v12 }
  0xcb   : > { %1372 = vmatpush3.bf16.msra.mxu1 %v2295_v20 }
  0xcc   : > { %1373 = vmatprep.subr.bf16.mxu1 %v1952_v3 }
  0xcd   : > { %542 = vmatpush1.bf16.msra.mxu0 %v2280_v14 }
  0xce   : > { %543 = vmatprep.subr.bf16.mxu0 %v2287_v16 }
  0xcf   : > { %1374 = vmatpush3.bf16.msra.mxu1 %v2310_v25 }
  0xd0   : > { %1375 = vmatprep.subr.bf16.mxu1 %v1952_v3 }
  0xd1   : > { %544 = vmatpush1.bf16.msra.mxu0 %v2292_v19 }
  0xd2   : > { %545 = vmatprep.subr.bf16.mxu0 %v2300_v22 }
  0xd3   : > { %1376 = vmatpush3.bf16.msra.mxu1 %v2323_v30 }
  0xd4   : > { %1377 = vmatprep.subr.bf16.mxu1 %v1952_v3 }
  0xd5   : > { %546 = vmatpush1.bf16.msra.mxu0 %v2307_v24 }
  0xd6   : > { %547 = vmatprep.subr.bf16.mxu0 %v2314_v27 }
  0xd7   : > { %1378 = vmatpush3.bf16.msra.mxu1 %v2331_v32 }
  0xd8   : > { %1379 = vmatprep.subr.bf16.mxu1 %v1952_v3 }
  0xd9   : > { %548 = vmatpush1.bf16.msra.mxu0 %v2318_v28 }
  0xda   : > { %652 = vmatprep.subr.bf16.mxu0 %v2239_v1 }
  0xdb   : > { %1380 = vmatpush3.bf16.msra.mxu1 %v2336_v33 }
  0xdc   : > { %566 = vmatmul.mubr.bf16.vlgmr.msra.gmra.mrb[0].mxu0 %v404_v31  ;;  %1385 = vmatprep.subr.bf16.mxu1 %v1952_v3 }
  0xdd   : > { %653 = vmatpush1.bf16.msra.mxu0 %v2241_v2  ;;  %684 = vmatprep.mubr.bf16.mxu0 %v1953_v4 }
  0xde   : > { %654 = vmatprep.subr.bf16.mxu0 %v2246_v5  ;;  %1382 = vmatmul.mubr.bf16.vlgmr.msra.gmra.mrb[0].mxu1 %v404_v31  ;;  %v1003_v31 = vsel %vm1002_vm5, 1, %v1953_v4 }
  0xdf   : > { %1386 = vmatpush3.bf16.msra.mxu1 %v2264_v10  ;;  %1401 = vmatprep.mubr.msk.bf16.mxu1 %vm1954_vm0, %v1952_v3 }
  0xe0   : > { %1387 = vmatprep.subr.bf16.mxu1 %v1952_v3 }
  0xe1   : > { %655 = vmatpush1.bf16.msra.mxu0 %v2251_v6 }
  0xe2   : > { %656 = vmatprep.subr.bf16.mxu0 %v2255_v7 }
  0xe3   : > { %1388 = vmatpush3.bf16.msra.mxu1 %v2274_v13 }
  0xe4   : > { %1389 = vmatprep.subr.bf16.mxu1 %v1952_v3 }
  0xe5   : > { %657 = vmatpush1.bf16.msra.mxu0 %v2259_v8 }
  0xe6   : > { %658 = vmatprep.subr.bf16.mxu0 %v2262_v9 }
  0xe7   : > { %1390 = vmatpush3.bf16.msra.mxu1 %v2284_v15 }
  0xe8   : > { %1391 = vmatprep.subr.bf16.mxu1 %v1952_v3 }
  0xe9   : > { %659 = vmatpush1.bf16.msra.mxu0 %v2267_v11 }
  0xea   : > { %660 = vmatprep.subr.bf16.mxu0 %v2271_v12 }
  0xeb   : > { %1392 = vmatpush3.bf16.msra.mxu1 %v2295_v20 }
  0xec   : > { %1393 = vmatprep.subr.bf16.mxu1 %v1952_v3 }
  0xed   : > { %661 = vmatpush1.bf16.msra.mxu0 %v2280_v14 }
  0xee   : > { %662 = vmatprep.subr.bf16.mxu0 %v2287_v16 }
  0xef   : > { %1394 = vmatpush3.bf16.msra.mxu1 %v2310_v25 }
  0xf0   : > { %1395 = vmatprep.subr.bf16.mxu1 %v1952_v3 }
  0xf1   : > { %663 = vmatpush1.bf16.msra.mxu0 %v2292_v19 }
  0xf2   : > { %664 = vmatprep.subr.bf16.mxu0 %v2300_v22 }
  0xf3   : > { %1396 = vmatpush3.bf16.msra.mxu1 %v2323_v30 }
  0xf4   : > { %1397 = vmatprep.subr.bf16.mxu1 %v1952_v3 }
  0xf5   : > { %665 = vmatpush1.bf16.msra.mxu0 %v2307_v24 }
  0xf6   : > { %666 = vmatprep.subr.bf16.mxu0 %v2314_v27 }
  0xf7   : > { %1398 = vmatpush3.bf16.msra.mxu1 %v2331_v32 }
  0xf8   : > { %1399 = vmatprep.subr.bf16.mxu1 %v1952_v3 }
  0xf9   : > { %667 = vmatpush1.bf16.msra.mxu0 %v2318_v28 }
  0xfa   : > { %772 = vmatprep.subr.bf16.mxu0 %v2239_v1 }
  0xfb   : > { %1400 = vmatpush3.bf16.msra.mxu1 %v2336_v33 }
  0xfc   : > { %1405 = vmatprep.subr.bf16.mxu1 %v1952_v3 }
 0x143   : > { %v646_v61 = vpop.permute.xlu0 %645 }
 0x144   : > { %vm647_vm3 = vcmp.eq.s32.totalorder %v646_v61, 1 }
 0x1af   : > { %v567_v35 = vpop.f32.mrb[0].mxu0 }
 0x1b0   : > { %v614_v37 = vadd.f32 %v567_v35, %v403_v34  ;;  %v569_v38 = vpop.f32.mrb[1].mxu0  ;;  %v1297_v34 = vld [vmem:[%s2220_s19 + $0x6] sm:$0x3f] }
 0x1b1   : > { %v571_v39 = vpop.f32.mrb[2].mxu0  ;;  %v624_v42 = vadd.f32 %v622_v36, %v569_v38  ;;  %v608_v44 = vpop.f32.mrb[0].mxu1 }
 0x1b2   : > { %v1295_v40 = vmul.f32 -1.442695, %v614_v37  ;;  %v572_v41 = vpop.f32.mrb[3].mxu0  ;;  %v1383_v45 = vpop.f32.mrb[1].mxu1  ;;  %v631_v53 = vadd.f32 %v2377_v51, %v608_v44 }
 0x1b3   : > { %v1296_v43 = vmul.f32 -1.442695, %v624_v42  ;;  %v611_v46 = vpop.f32.mrb[2].mxu1 }
 0x1b4   : > { %1627 = vpow2.f32 %v1295_v40  ;;  %v1384_v47 = vpop.f32.mrb[3].mxu1 }
 0x1b5   : > { %1629 = vpow2.f32 %v1296_v43 }
 0x1be   : > { %v1628_v48 = vpop.eup %1627 }
 0x1bf   : > { %v618_v49 = vadd.f32 1.0, %v1628_v48  ;;  %v1630_v50 = vpop.eup %1629 }
 0x1c0   : > { %v628_v52 = vadd.f32 1.0, %v1630_v50  ;;  %v752_v50 = vrot.slane %v1297_v34, 4 }
 0x1c1   : > { %1631 = vrcp.f32 %v618_v49 }
 0x1c2   : > { %1633 = vrcp.f32 %v628_v52 }
 0x1cb   : > { %v1632_v55 = vpop.eup %1631 }
 0x1cc   : > { %v632_v56 = vmul.f32 %v1632_v55, %v631_v53  ;;  %v1634_v58 = vpop.eup %1633 }
 0x1cd   : > { %v637_v59 = vsub.f32 1.0, %v1634_v58  ;;  %v639_v63 = vmul.f32 %v1634_v58, %v2320_v29 }
 0x1ce   : > { %v635_v57 = vadd.f32 %v633_v54, %v632_v56 }
 0x1d0   : > { %1635 = vtanh.f32 %v635_v57 }
 0x1da   : > { %v1636_v60 = vpop.eup %1635 }
 0x1db   : > { %v638_v62 = vmul.f32 %v1636_v60, %v637_v59  ;;  %v766_v59 = vpop.permute.xlu0 %765 }
 0x1dc   : > { %vm767_vm6 = vcmp.eq.s32.totalorder %v766_v59, 1 }
 0x1dd   : > { %v640_v0 = vadd.f32 %v639_v63, %v638_v62 }
 0x1df   : > { %v2382_v17 = vsel %vm647_vm3, %v640_v0, %v2320_v29  ;;  %v883_v29 = vsel %vm882_vm4, 1, %v1953_v4 }
 0x1e0   : > { %v651_v18 = vpack.c.bf16 %v2382_v17, %v2382_v17  ;;  %885 = vperm.xlu1 %1594, %v883_v29  }
 0x1e2   : > { %685 = vmatmul.mubr.bf16.vlgmr.msra.gmra.mrb[4].mxu0 %v651_v18  ;;  %1402 = vmatmul.mubr.bf16.vlgmr.msra.gmra.mrb[4].mxu1 %v651_v18 }
 0x1e3   : > { %773 = vmatpush1.bf16.msra.mxu0 %v2241_v2  ;;  %1406 = vmatpush3.bf16.msra.mxu1 %v2264_v10 }
 0x1e4   : > { %774 = vmatprep.subr.bf16.mxu0 %v2246_v5  ;;  %1407 = vmatprep.subr.bf16.mxu1 %v1952_v3 }
 0x1e5   : > { %804 = vmatprep.mubr.bf16.mxu0 %v1953_v4  ;;  %1421 = vmatprep.mubr.msk.bf16.mxu1 %vm1954_vm0, %v1952_v3 }
 0x1e6   : > { %1005 = vperm.xlu1 %1594, %v1003_v31  }
 0x1e7   : > { %775 = vmatpush1.bf16.msra.mxu0 %v2251_v6  ;;  %1408 = vmatpush3.bf16.msra.mxu1 %v2274_v13 }
 0x1e8   : > { %776 = vmatprep.subr.bf16.mxu0 %v2255_v7  ;;  %1409 = vmatprep.subr.bf16.mxu1 %v1952_v3 }
 0x1eb   : > { %777 = vmatpush1.bf16.msra.mxu0 %v2259_v8  ;;  %1410 = vmatpush3.bf16.msra.mxu1 %v2284_v15 }
 0x1ec   : > { %778 = vmatprep.subr.bf16.mxu0 %v2262_v9  ;;  %1411 = vmatprep.subr.bf16.mxu1 %v1952_v3 }
 0x1ef   : > { %779 = vmatpush1.bf16.msra.mxu0 %v2267_v11  ;;  %1412 = vmatpush3.bf16.msra.mxu1 %v2295_v20 }
 0x1f0   : > { %780 = vmatprep.subr.bf16.mxu0 %v2271_v12  ;;  %1413 = vmatprep.subr.bf16.mxu1 %v1952_v3 }
 0x1f3   : > { %781 = vmatpush1.bf16.msra.mxu0 %v2280_v14  ;;  %1414 = vmatpush3.bf16.msra.mxu1 %v2310_v25 }
 0x1f4   : > { %782 = vmatprep.subr.bf16.mxu0 %v2287_v16  ;;  %1415 = vmatprep.subr.bf16.mxu1 %v1952_v3 }
 0x1f7   : > { %783 = vmatpush1.bf16.msra.mxu0 %v2292_v19  ;;  %1416 = vmatpush3.bf16.msra.mxu1 %v2323_v30 }
 0x1f8   : > { %784 = vmatprep.subr.bf16.mxu0 %v2300_v22  ;;  %1417 = vmatprep.subr.bf16.mxu1 %v1952_v3 }
 0x1fb   : > { %785 = vmatpush1.bf16.msra.mxu0 %v2307_v24  ;;  %1418 = vmatpush3.bf16.msra.mxu1 %v2331_v32 }
 0x1fc   : > { %786 = vmatprep.subr.bf16.mxu0 %v2314_v27  ;;  %1419 = vmatprep.subr.bf16.mxu1 %v1952_v3 }
 0x1ff   : > { %787 = vmatpush1.bf16.msra.mxu0 %v2318_v28  ;;  %1420 = vmatpush3.bf16.msra.mxu1 %v2336_v33 }
 0x200   : > { %892 = vmatprep.subr.bf16.mxu0 %v2239_v1  ;;  %1425 = vmatprep.subr.bf16.mxu1 %v1952_v3  ;;  %v741_v1 = vrot.slane %v1297_v34, 2 }
 0x25f   : > { %v886_v18 = vpop.permute.xlu1 %885 }
 0x260   : > { %vm887_vm7 = vcmp.eq.s32.totalorder %v886_v18, 1 }
 0x2b5   : > { %v686_v35 = vpop.f32.mrb[4].mxu0  ;;  %v727_v36 = vpop.f32.mrb[4].mxu1 }
 0x2b6   : > { %v733_v37 = vadd.f32 %v1297_v34, %v686_v35  ;;  %v688_v38 = vpop.f32.mrb[5].mxu0  ;;  %v1403_v39 = vpop.f32.mrb[5].mxu1  ;;  %v750_v52 = vadd.f32 %v2377_v51, %v727_v36  ;;  %v1303_v35 = vld [vmem:[%s2220_s19 + $0x12] sm:$0x3f] }
 0x2b7   : > { %v690_v40 = vpop.f32.mrb[6].mxu0  ;;  %v730_v41 = vpop.f32.mrb[6].mxu1  ;;  %v743_v45 = vadd.f32 %v741_v1, %v688_v38 }
 0x2b8   : > { %v1298_v42 = vmul.f32 -1.442695, %v733_v37  ;;  %v691_v43 = vpop.f32.mrb[7].mxu0  ;;  %v1404_v44 = vpop.f32.mrb[7].mxu1  ;;  %v981_v37 = vrot.slane %v1303_v35, 2 }
 0x2b9   : > { %v1299_v21 = vmul.f32 -1.442695, %v743_v45 }
 0x2ba   : > { %1637 = vpow2.f32 %v1298_v42 }
 0x2bb   : > { %1639 = vpow2.f32 %v1299_v21 }
 0x2c4   : > { %v1638_v46 = vpop.eup %1637 }
 0x2c5   : > { %v737_v47 = vadd.f32 1.0, %v1638_v46  ;;  %v1640_v48 = vpop.eup %1639 }
 0x2c6   : > { %v747_v49 = vadd.f32 1.0, %v1640_v48 }
 0x2c7   : > { %1641 = vrcp.f32 %v737_v47 }
 0x2c8   : > { %1643 = vrcp.f32 %v747_v49 }
 0x2d1   : > { %v1642_v53 = vpop.eup %1641 }
 0x2d2   : > { %v751_v54 = vmul.f32 %v1642_v53, %v750_v52  ;;  %v1644_v56 = vpop.eup %1643  ;;  %v992_v52 = vrot.slane %v1303_v35, 4 }
 0x2d3   : > { %v756_v57 = vsub.f32 1.0, %v1644_v56  ;;  %v758_v60 = vmul.f32 %v1644_v56, %v2382_v17 }
 0x2d4   : > { %v754_v55 = vadd.f32 %v752_v50, %v751_v54 }
 0x2d6   : > { %1645 = vtanh.f32 %v754_v55 }
 0x2e0   : > { %v1646_v58 = vpop.eup %1645 }
 0x2e1   : > { %v757_v61 = vmul.f32 %v1646_v58, %v756_v57 }
 0x2e3   : > { %v759_v62 = vadd.f32 %v758_v60, %v757_v61  ;;  %v1006_v60 = vpop.permute.xlu1 %1005 }
 0x2e4   : > { %vm1007_vm8 = vcmp.eq.s32.totalorder %v1006_v60, 1 }
 0x2e5   : > { %v2431_v63 = vsel %vm767_vm6, %v759_v62, %v2382_v17 }
 0x2e6   : > { %v771_v0 = vpack.c.bf16 %v2431_v63, %v2431_v63 }
 0x2e8   : > { %805 = vmatmul.mubr.bf16.vlgmr.msra.gmra.mrb[8].mxu0 %v771_v0  ;;  %1422 = vmatmul.mubr.bf16.vlgmr.msra.gmra.mrb[8].mxu1 %v771_v0 }
 0x2e9   : > { %893 = vmatpush1.bf16.msra.mxu0 %v2241_v2  ;;  %1426 = vmatpush3.bf16.msra.mxu1 %v2264_v10  ;;  %v1300_v2 = vld [vmem:[%s2220_s19 + $0xc] sm:$0x3f] }
 0x2ea   : > { %894 = vmatprep.subr.bf16.mxu0 %v2246_v5  ;;  %1427 = vmatprep.subr.bf16.mxu1 %v1952_v3 }
 0x2eb   : > { %924 = vmatprep.mubr.bf16.mxu0 %v1953_v4  ;;  %1441 = vmatprep.mubr.msk.bf16.mxu1 %vm1954_vm0, %v1952_v3 }
 0x2ed   : > { %895 = vmatpush1.bf16.msra.mxu0 %v2251_v6  ;;  %1428 = vmatpush3.bf16.msra.mxu1 %v2274_v13  ;;  %v861_v6 = vrot.slane %v1300_v2, 2 }
 0x2ee   : > { %896 = vmatprep.subr.bf16.mxu0 %v2255_v7  ;;  %1429 = vmatprep.subr.bf16.mxu1 %v1952_v3 }
 0x2f1   : > { %897 = vmatpush1.bf16.msra.mxu0 %v2259_v8  ;;  %1430 = vmatpush3.bf16.msra.mxu1 %v2284_v15 }
 0x2f2   : > { %898 = vmatprep.subr.bf16.mxu0 %v2262_v9  ;;  %1431 = vmatprep.subr.bf16.mxu1 %v1952_v3 }
 0x2f5   : > { %899 = vmatpush1.bf16.msra.mxu0 %v2267_v11  ;;  %1432 = vmatpush3.bf16.msra.mxu1 %v2295_v20 }
 0x2f6   : > { %900 = vmatprep.subr.bf16.mxu0 %v2271_v12  ;;  %1433 = vmatprep.subr.bf16.mxu1 %v1952_v3 }
 0x2f9   : > { %901 = vmatpush1.bf16.msra.mxu0 %v2280_v14  ;;  %1434 = vmatpush3.bf16.msra.mxu1 %v2310_v25 }
 0x2fa   : > { %902 = vmatprep.subr.bf16.mxu0 %v2287_v16  ;;  %1435 = vmatprep.subr.bf16.mxu1 %v1952_v3 }
 0x2fd   : > { %903 = vmatpush1.bf16.msra.mxu0 %v2292_v19  ;;  %1436 = vmatpush3.bf16.msra.mxu1 %v2323_v30 }
 0x2fe   : > { %904 = vmatprep.subr.bf16.mxu0 %v2300_v22  ;;  %1437 = vmatprep.subr.bf16.mxu1 %v1952_v3 }
 0x301   : > { %905 = vmatpush1.bf16.msra.mxu0 %v2307_v24  ;;  %1438 = vmatpush3.bf16.msra.mxu1 %v2331_v32  ;;  %v872_v24 = vrot.slane %v1300_v2, 4 }
 0x302   : > { %906 = vmatprep.subr.bf16.mxu0 %v2314_v27  ;;  %1439 = vmatprep.subr.bf16.mxu1 %v1952_v3 }
 0x305   : > { %907 = vmatpush1.bf16.msra.mxu0 %v2318_v28  ;;  %1440 = vmatpush3.bf16.msra.mxu1 %v2336_v33 }
 0x3bb   : > { %v806_v4 = vpop.f32.mrb[8].mxu0  ;;  %v847_v5 = vpop.f32.mrb[8].mxu1 }
 0x3bc   : > { %v853_v7 = vadd.f32 %v1300_v2, %v806_v4  ;;  %v808_v8 = vpop.f32.mrb[9].mxu0  ;;  %v1423_v9 = vpop.f32.mrb[9].mxu1  ;;  %v870_v25 = vadd.f32 %v2377_v51, %v847_v5  ;;  %v1667_v2 = vld [vmem:[#allocation11] sm:$0xff] (!%p1306_p5)   ;;  %v1668_v4 = vld [vmem:[#allocation11 + $0x8] sm:$0xff] (!%p1306_p5)   ;;  %v1669_v5 = vld [vmem:[#allocation11 + $0x10] sm:$0xff] (!%p1306_p5)  }
 0x3bd   : > { %v810_v10 = vpop.f32.mrb[10].mxu0  ;;  %v850_v11 = vpop.f32.mrb[10].mxu1  ;;  %v863_v15 = vadd.f32 %v861_v6, %v808_v8  ;;  %v1670_v6 = vld [vmem:[#allocation11 + $0x18] sm:$0xff] (!%p1306_p5)   ;;  %v1672_v8 = vld [vmem:[#allocation11 + $0x28] sm:$0xff] (!%p1306_p5)   ;;  %v1673_v9 = vld [vmem:[#allocation11 + $0x30] sm:$0xff] (!%p1306_p5)  }
 0x3be   : > { %v1301_v12 = vmul.f32 -1.442695, %v853_v7  ;;  %v811_v13 = vpop.f32.mrb[11].mxu0  ;;  %v1424_v14 = vpop.f32.mrb[11].mxu1  ;;  %v1671_v7 = vld [vmem:[#allocation11 + $0x20] sm:$0xff] (!%p1306_p5)   ;;  %v1674_v10 = vld [vmem:[#allocation11 + $0x38] sm:$0xff] (!%p1306_p5)  }
 0x3bf   : > { %v1302_v16 = vmul.f32 -1.442695, %v863_v15  ;;  %v1307_v13 = vld [vmem:[#allocation12] ss:$0 sm:$0xff] (!%p1306_p5) }
 0x3c0   : > { %1647 = vpow2.f32 %v1301_v12 }
 0x3c1   : > { %1649 = vpow2.f32 %v1302_v16 }
 0x3ca   : > { %v1648_v3 = vpop.eup %1647 }
 0x3cb   : > { %v857_v19 = vadd.f32 1.0, %v1648_v3  ;;  %v1650_v20 = vpop.eup %1649 }
 0x3cc   : > { %v867_v22 = vadd.f32 1.0, %v1650_v20 }
 0x3cd   : > { %1651 = vrcp.f32 %v857_v19 }
 0x3ce   : > { %1653 = vrcp.f32 %v867_v22 }
 0x3d7   : > { %v1652_v27 = vpop.eup %1651 }
 0x3d8   : > { %v871_v28 = vmul.f32 %v1652_v27, %v870_v25  ;;  %v1654_v32 = vpop.eup %1653 }
 0x3d9   : > { %v876_v33 = vsub.f32 1.0, %v1654_v32  ;;  %v878_v26 = vmul.f32 %v1654_v32, %v2431_v63 }
 0x3da   : > { %v874_v30 = vadd.f32 %v872_v24, %v871_v28 }
 0x3dc   : > { %1655 = vtanh.f32 %v874_v30 }
 0x3e6   : > { %v1656_v17 = vpop.eup %1655 }
 0x3e7   : > { %v877_v23 = vmul.f32 %v1656_v17, %v876_v33 }
 0x3e9   : > { %v879_v29 = vadd.f32 %v878_v26, %v877_v23 }
 0x3eb   : > { %v888_v31 = vsel %vm887_vm7, %v879_v29, %v2431_v63 }
 0x3ec   : > { %v891_v34 = vpack.c.bf16 %v888_v31, %v888_v31 }
 0x3ee   : > { %925 = vmatmul.mubr.bf16.vlgmr.msra.gmra.mrb[12].mxu0 %v891_v34  ;;  %1442 = vmatmul.mubr.bf16.vlgmr.msra.gmra.mrb[12].mxu1 %v891_v34 }
 0x4c1   : > { %v926_v36 = vpop.f32.mrb[12].mxu0  ;;  %v967_v1 = vpop.f32.mrb[12].mxu1 }
 0x4c2   : > { %v973_v38 = vadd.f32 %v1303_v35, %v926_v36  ;;  %v928_v39 = vpop.f32.mrb[13].mxu0  ;;  %v1443_v40 = vpop.f32.mrb[13].mxu1  ;;  %v990_v53 = vadd.f32 %v2377_v51, %v967_v1  ;;  %v1955_v51 = vmov (!%p1306_p5), 0.0  }
 0x4c3   : > { %v930_v41 = vpop.f32.mrb[14].mxu0  ;;  %v970_v42 = vpop.f32.mrb[14].mxu1  ;;  %v983_v21 = vadd.f32 %v981_v37, %v928_v39  ;;  %1445 = vmatprep.subr.bf16.mxu0 (!%p1306_p5), %v1955_v51  ;;  %1461 = vmatprep.mubr.msk.bf16.mxu0 (!%p1306_p5), %vm1956_vm9, %v1955_v51 }
 0x4c4   : > { %v1304_v43 = vmul.f32 -1.442695, %v973_v38  ;;  %v931_v44 = vpop.f32.mrb[15].mxu0  ;;  %v1444_v45 = vpop.f32.mrb[15].mxu1  ;;  %1446 = vmatpush3.bf16.msra.mxu0 (!%p1306_p5), %v1667_v2 }
 0x4c5   : > { %v1305_v46 = vmul.f32 -1.442695, %v983_v21  ;;  %1447 = vmatprep.subr.bf16.mxu0 (!%p1306_p5), %v1955_v51 }
 0x4c6   : > { %1657 = vpow2.f32 %v1304_v43 }
 0x4c7   : > { %1659 = vpow2.f32 %v1305_v46 }
 0x4c8   : > { %1448 = vmatpush3.bf16.msra.mxu0 (!%p1306_p5), %v1668_v4 }
 0x4c9   : > { %1449 = vmatprep.subr.bf16.mxu0 (!%p1306_p5), %v1955_v51 }
 0x4cc   : > { %1450 = vmatpush3.bf16.msra.mxu0 (!%p1306_p5), %v1669_v5 }
 0x4cd   : > { %1451 = vmatprep.subr.bf16.mxu0 (!%p1306_p5), %v1955_v51 }
 0x4d0   : > { %v1658_v47 = vpop.eup %1657  ;;  %1452 = vmatpush3.bf16.msra.mxu0 (!%p1306_p5), %v1670_v6 }
 0x4d1   : > { %v977_v48 = vadd.f32 1.0, %v1658_v47  ;;  %v1660_v49 = vpop.eup %1659  ;;  %1453 = vmatprep.subr.bf16.mxu0 (!%p1306_p5), %v1955_v51 }
 0x4d2   : > { %v987_v50 = vadd.f32 1.0, %v1660_v49 }
 0x4d3   : > { %1661 = vrcp.f32 %v977_v48 }
 0x4d4   : > { %1663 = vrcp.f32 %v987_v50  ;;  %1454 = vmatpush3.bf16.msra.mxu0 (!%p1306_p5), %v1671_v7 }
 0x4d5   : > { %1455 = vmatprep.subr.bf16.mxu0 (!%p1306_p5), %v1955_v51 }
 0x4d8   : > { %1456 = vmatpush3.bf16.msra.mxu0 (!%p1306_p5), %v1672_v8 }
 0x4d9   : > { %1457 = vmatprep.subr.bf16.mxu0 (!%p1306_p5), %v1955_v51 }
 0x4dc   : > { %1458 = vmatpush3.bf16.msra.mxu0 (!%p1306_p5), %v1673_v9 }
 0x4dd   : > { %v1662_v54 = vpop.eup %1661  ;;  %1459 = vmatprep.subr.bf16.mxu0 (!%p1306_p5), %v1955_v51 }
 0x4de   : > { %v991_v55 = vmul.f32 %v1662_v54, %v990_v53  ;;  %v1664_v57 = vpop.eup %1663 }
 0x4df   : > { %v996_v58 = vsub.f32 1.0, %v1664_v57  ;;  %v998_v62 = vmul.f32 %v1664_v57, %v888_v31 }
 0x4e0   : > { %v994_v56 = vadd.f32 %v992_v52, %v991_v55  ;;  %1460 = vmatpush3.bf16.msra.mxu0 (!%p1306_p5), %v1674_v10 }
 0x4e2   : > { %1665 = vtanh.f32 %v994_v56 }
 0x4ec   : > { %v1666_v59 = vpop.eup %1665  ;;  %1013 = sbr.rel (%p1306_p5) target bundleno = 1491 (0x5d3), region = 76 }
 0x4ed   : > { %v997_v61 = vmul.f32 %v1666_v59, %v996_v58 }
 0x4ef   : > { %v999_v63 = vadd.f32 %v998_v62, %v997_v61 }
 0x4f1   : > { %v1008_v0 = vsel %vm1007_vm8, %v999_v63, %v888_v31 }
 0x4f2   : > { %1009 = vst [vmem:[#allocation2] sm:$0x3] %v1008_v0 }
 0x4f9   : > { %v1014_v11 = vld [vmem:[#allocation2] sm:$0x3] }
 0x4fa   : > { %v1015_v12 = vpack.c.bf16 %v1014_v11, %v1014_v11 }
 0x4fc   : > { %1462 = vmatmul.mubr.bf16.vlgmr.msra.gmra.mrb[0].mxu0 %v1015_v12 }
 0x5cf   : > { %v1121_v14 = vpop.f32.mrb[0].mxu0 }
 0x5d0   : > { %v1122_v15 = vadd.f32 %v1307_v13, %v1121_v14  ;;  %v1463_v16 = vpop.f32.mrb[1].mxu0 }
 0x5d1   : > { %v1124_v3 = vpop.f32.mrb[2].mxu0 }
 0x5d2   : > { %1127 = vst [vmem:[#allocation14] sm:$0x3] %v1122_v15  ;;  %v1464_v19 = vpop.f32.mrb[3].mxu0 }
 0x5d3 PF: > { %s2541_s24 = sadd.s32 4294967295, %s1937_s26   ;;  %s1957_s14 = smov [#allocation14]  }
 0x5d4   : > { %p2477_p9 = scmp.eq.s32.totalorder %s2541_s24, 1  ;;  %s1137_s7 = sshll.u32 %s1957_s14, 4  ;;  %s1138_s7 = int_to_ptr.vmem [resolvable:$true] %s1137_s7 }
 0x5d5   : > { %s1845_s15 = scalar_lea.vmem %s1138_s7, 32  ;;  %p1852_p11 = scmp.lt.s32.totalorder %s1138_s7, %s1138_s7 }
 0x5d6   : > { %p1846_p1 = scmp.ne.s32.totalorder %s1138_s7, %s1845_s15  ;;  %p1853_p13 = scmp.lt.s32.totalorder %s1845_s15, %s1845_s15 }
 0x5d8   : > { %p1847_p3 = pnand %p1846_p1, %p2477_p9  ;;  %p1854_p2 = por %p1853_p13, %p1852_p11 }
 0x5da   : > { %p1848_p10 = pneg %p1847_p3 }
 0x5dc   : > { %p1855_p7 = pnand %p1854_p2, %p1848_p10 }
 0x5de   : > { %1858 = shalt.err (!%p1855_p7)
}
 0x5df   : > { %s1859_s12 = scalar_lea.hbm %s2527_s6, 32 }
 0x5e0   : > { %p1860_p6 = scmp.ne.s32.totalorder %s2527_s6, %s1859_s12  ;;  %p1865_p4 = scmp.lt.u32.totalorder %s1859_s12, %s2527_s6 }
 0x5e2   : > { %p1861_p8 = pnand %p1860_p6, %p2477_p9 }
 0x5e4   : > { %p1862_p0 = pneg %p1861_p8 }
 0x5e6   : > { %p1867_p12 = pnand %p1865_p4, %p1862_p0 }
 0x5e8   : > { %1870 = shalt.err (!%p1867_p12)
}
 0x5e9   : > { %1491 = dma.vmem_to_hbm [thread:$0]  (%p2477_p9), %s1138_s7, 32, %s2527_s6, [#allocation5]  }
 0x5ea   : > { %1912 = dma.done.wait (%p2477_p9), [#allocation5], 32  }
 0x5eb   : > { %1914 = vsyncadd (%p2477_p9), [#allocation5], 4294967264 }
 0x5ec PF: > { %s23_s26 = sadd.s32 1, %s1937_s26   ;;  %s2543_s21 = smov %s1921_s22 }
 0x5ed   : > { %p20_p5 = scmp.ge.s32.totalorder %s23_s26, 4   ;;  %s2544_s22 = smov %s1925_s23 }
 0x5ee   : > { %s2545_s23 = smov %s2176_s16  ;;  %s2546_s24 = smov %s1933_s25 }
 0x5ef   : > { %s2547_s25 = smov %s2549_s18  ;;  %22 = sbr.rel (!%p20_p5) target bundleno = 8 (0x8), region = 114 }
 0x5f6   :  { %1150 = vsyncpa [#allocation4], 1 }
 0x5f7   :  { %1152 = vsyncpa [#allocation4 + $0x1], 1 }
 0x5f8   :  { %1153 = vsyncpa [#allocation7], 1 }
 0x5f9   :  { %1154 = vsyncpa [#allocation10], 1 }
 0x5fa   :  { %1155 = vsyncpa [#allocation13], 1 }
 0x5fb   :  { %1156 = vsyncpa [#allocation5], 1 }
 0x5fc   :  { %1158 = vsyncpa [#allocation5 + $0x1], 1 }

</bundles_post_ra>
